<compile_context>
chip_gen: v7x
topology: tpu7x:2x2x1
jax: 0.10.0
libtpu: 0.0.40
codegen_flags: <defaults>
</compile_context>

<pallas_src>
import functools

import jax
import jax.numpy as jnp
from jax.experimental import pallas as pl
from jax.experimental.pallas import tpu as pltpu

HIDDEN_SIZE = 64   # Config.HIDDEN_SIZE (fixed by the module spec)


def _round_up(x, m):
    return (x + m - 1) // m * m


def _policy_kernel(x_ref, w1_ref, b1_ref, w2_ref, b2_ref, wh_ref, bh_ref,
                   out_ref):
    x = x_ref[...]

    # feature_extractor: Linear -> ReLU -> Linear -> ReLU
    h1 = jnp.dot(x, w1_ref[...], preferred_element_type=jnp.float32) + b1_ref[...]
    h1 = jnp.maximum(h1, 0.0)
    h2 = jnp.dot(h1, w2_ref[...], preferred_element_type=jnp.float32) + b2_ref[...]
    h2 = jnp.maximum(h2, 0.0)

    # fused actor|critic head -> [tb, head_pad] (head_pad = round_up(out+1, 8))
    out_ref[...] = (jnp.dot(h2, wh_ref[...], preferred_element_type=jnp.float32)
                    + bh_ref[...]).astype(out_ref.dtype)


@functools.partial(jax.jit, static_argnames=("batch_tile",))
def policy_network_forward(x, params, *, batch_tile=2048):
    """x: [B, input_size] float32. Returns (action_mean [B, out], value [B, 1]).

    `params` must contain the precomputed fused head (see fuse_head /
    init_params): "w_head" [H, head_pad], "b_head" [1, head_pad].
    """
    B, in_size = x.shape
    hidden = params["w1"].shape[1]
    out_size = params["wa"].shape[1]
    w_head = params["w_head"]
    b_head = params["b_head"]
    head_pad = w_head.shape[1]

    # --- batch tiling ------------------------------------------------------
    # Pad B only to a multiple of 8 (sublane); the ragged last grid block is
    # masked by Pallas, so no full-tile over-padding / wasted rows.
    B_pad = _round_up(B, 8)
    tb = min(_round_up(batch_tile, 8), B_pad)
    # v7x has 2 TensorCores and shards the "parallel" axis across them: if a
    # single tile would cover a large batch, split it so the grid has >=2
    # steps. Tiny batches keep grid=1 (cheaper; v5e/v6e have 1 TC anyway).
    if tb == B_pad and B_pad >= 1024:
        tb = _round_up((B_pad + 1) // 2, 8)
    if B_pad != B:
        x = jnp.pad(x, ((0, B_pad - B), (0, 0)))
    grid = (pl.cdiv(B_pad, tb),)

    # VMEM footprint: double-buffered x + out tiles plus resident weights.
    # At tb=2048, in_size=8: ~0.2 MiB -- far under v7x's 64 MiB physical VMEM
    # and the default scoped-VMEM limit on every generation.
    vmem_bytes = 4 * (2 * tb * in_size + 2 * tb * head_pad
                      + in_size * hidden + hidden
                      + hidden * hidden + hidden
                      + hidden * head_pad + head_pad)
    assert vmem_bytes < 48 * 1024 * 1024, vmem_bytes

    # Weights return the same block index every step -> VMEM-resident across
    # the whole grid. (pl.Buffered(1) would drop the redundant second buffer;
    # skipped: negligible VMEM at these sizes, default buffering is safest.)
    def const(shape):
        return pl.BlockSpec(shape, lambda i: (0, 0))

    out = pl.pallas_call(
        _policy_kernel,
        out_shape=jax.ShapeDtypeStruct((B_pad, head_pad), jnp.float32),
        grid=grid,
        in_specs=[
            pl.BlockSpec((tb, in_size), lambda i: (i, 0)),    # x: batch-tiled
            const((in_size, hidden)), const((1, hidden)),      # w1, b1
            const((hidden, hidden)),  const((1, hidden)),      # w2, b2
            const((hidden, head_pad)), const((1, head_pad)),   # fused head
        ],
        out_specs=pl.BlockSpec((tb, head_pad), lambda i: (i, 0)),
        compiler_params=pltpu.CompilerParams(
            dimension_semantics=("parallel",)),
    )(x, params["w1"], params["b1"], params["w2"], params["b2"],
      w_head, b_head)

    action_mean = out[:B, :out_size]
    value = out[:B, out_size:out_size + 1]
    return action_mean, value


def fuse_head(params):
    """Precompute the fused actor|critic head once (hoisted out of forward).

    Concatenates wa|wc (ba|bc) and zero-pads the head width to a multiple of 8
    so the kernel's output block has a full-extent last axis.
    """
    w_head = jnp.concatenate([params["wa"], params["wc"]], axis=1)  # [H, out+1]
    b_head = jnp.concatenate([params["ba"], params["bc"]], axis=1)  # [1, out+1]
    head_w = w_head.shape[1]
    head_pad = _round_up(head_w, 8)
    w_head = jnp.pad(w_head, ((0, 0), (0, head_pad - head_w)))
    b_head = jnp.pad(b_head, ((0, 0), (0, head_pad - head_w)))
    return dict(params, w_head=w_head, b_head=b_head)


def init_params(key, input_size, output_size, hidden=HIDDEN_SIZE):
    """Deterministic parameter init (uniform, roughly matching nn.Linear)."""
    ks = jax.random.split(key, 8)

    def lin(kw, kb, fan_in, fan_out):
        bound = 1.0 / jnp.sqrt(fan_in)
        w = jax.random.uniform(kw, (fan_in, fan_out), jnp.float32, -bound, bound)
        b = jax.random.uniform(kb, (1, fan_out), jnp.float32, -bound, bound)
        return w, b

    w1, b1 = lin(ks[0], ks[1], input_size, hidden)
    w2, b2 = lin(ks[2], ks[3], hidden, hidden)
    wa, ba = lin(ks[4], ks[5], hidden, output_size)
    wc, bc = lin(ks[6], ks[7], hidden, 1)
    params = {"w1": w1, "b1": b1, "w2": w2, "b2": b2,
              "wa": wa, "ba": ba, "wc": wc, "bc": bc}
    return fuse_head(params)


if __name__ == "__main__":
    key = jax.random.PRNGKey(0)
    k_x, k_p, k_x2 = jax.random.split(key, 3)

    input_size = 8     # small observation vector
    output_size = 4    # small action space
    batch = 32         # Config.BATCH_SIZE

    params = init_params(k_p, input_size, output_size)

    def ref_forward(x):
        # Reference in plain JAX (same math as the PyTorch forward).
        h1 = jnp.maximum(x @ params["w1"] + params["b1"], 0.0)
        h2 = jnp.maximum(h1 @ params["w2"] + params["b2"], 0.0)
        return h2 @ params["wa"] + params["ba"], h2 @ params["wc"] + params["bc"]

    # Case 1: steady-state small batch (grid = 1).
    x = jax.random.normal(k_x, (batch, input_size), dtype=jnp.float32)
    action_mean, value = policy_network_forward(x, params)
    jax.block_until_ready((action_mean, value))
    ref_a, ref_v = ref_forward(x)
    assert action_mean.shape == (batch, output_size)
    assert value.shape == (batch, 1)
    assert jnp.allclose(action_mean, ref_a, atol=1e-5)
    assert jnp.allclose(value, ref_v, atol=1e-5)

    # Case 2: batch not a multiple of the tile -> multi-step grid with a
    # ragged last block (exercises minimal padding + block masking).
    x2 = jax.random.normal(k_x2, (300, input_size), dtype=jnp.float32)
    a2, v2 = policy_network_forward(x2, params, batch_tile=128)
    jax.block_until_ready((a2, v2))
    ref_a2, ref_v2 = ref_forward(x2)
    assert a2.shape == (300, output_size)
    assert v2.shape == (300, 1)
    assert jnp.allclose(a2, ref_a2, atol=1e-5)
    assert jnp.allclose(v2, ref_v2, atol=1e-5)

    print("KERNEL_OK")
</pallas_src>

<mosaic_0001>
module attributes {stable_mosaic.version = 11 : i64} {
  func.func @_policy_kernel(%arg0: i32, %arg1: memref<32x8xf32, #tpu.memory_space<vmem>>, %arg2: memref<8x64xf32, #tpu.memory_space<vmem>>, %arg3: memref<1x64xf32, #tpu.memory_space<vmem>>, %arg4: memref<64x64xf32, #tpu.memory_space<vmem>>, %arg5: memref<1x64xf32, #tpu.memory_space<vmem>>, %arg6: memref<64x8xf32, #tpu.memory_space<vmem>>, %arg7: memref<1x8xf32, #tpu.memory_space<vmem>>, %arg8: memref<32x8xf32, #tpu.memory_space<vmem>>) attributes {dimension_semantics = [#tpu.dimension_semantics<parallel>], iteration_bounds = array<i64: 1>, scalar_prefetch = 0 : i64, scratch_operands = 0 : i64, tpu.core_type = #tpu.core_type<tc>, window_params = [{transform_indices = @transform_0, window_bounds = array<i64: 32, 8>}, {pipeline_mode = #tpu.pipeline_mode<synchronous>, transform_indices = @transform_1, window_bounds = array<i64: 8, 64>}, {pipeline_mode = #tpu.pipeline_mode<synchronous>, transform_indices = @transform_2, window_bounds = array<i64: 1, 64>}, {pipeline_mode = #tpu.pipeline_mode<synchronous>, transform_indices = @transform_3, window_bounds = array<i64: 64, 64>}, {pipeline_mode = #tpu.pipeline_mode<synchronous>, transform_indices = @transform_4, window_bounds = array<i64: 1, 64>}, {pipeline_mode = #tpu.pipeline_mode<synchronous>, transform_indices = @transform_5, window_bounds = array<i64: 64, 8>}, {pipeline_mode = #tpu.pipeline_mode<synchronous>, transform_indices = @transform_6, window_bounds = array<i64: 1, 8>}, {transform_indices = @transform_7, window_bounds = array<i64: 32, 8>}]} {
    %c0 = arith.constant 0 : index
    %c0_0 = arith.constant 0 : index
    %0 = vector.load %arg1[%c0, %c0_0] : memref<32x8xf32, #tpu.memory_space<vmem>>, vector<32x8xf32>
    %c0_1 = arith.constant 0 : index
    %c0_2 = arith.constant 0 : index
    %1 = vector.load %arg2[%c0_1, %c0_2] : memref<8x64xf32, #tpu.memory_space<vmem>>, vector<8x64xf32>
    %cst = arith.constant dense<0.000000e+00> : vector<32x64xf32>
    %2 = tpu.matmul %0, %1, %cst {dimension_numbers = #tpu.dot_dimension_numbers<[1], [0], [0], [1], [0, 0, 1, 1], [], []>} : vector<32x8xf32>, vector<8x64xf32>, vector<32x64xf32> -> vector<32x64xf32>
    %c0_3 = arith.constant 0 : index
    %c0_4 = arith.constant 0 : index
    %3 = vector.load %arg3[%c0_3, %c0_4] : memref<1x64xf32, #tpu.memory_space<vmem>>, vector<1x64xf32>
    %4 = vector.broadcast %3 : vector<1x64xf32> to vector<32x64xf32>
    %5 = arith.addf %2, %4 : vector<32x64xf32>
    %cst_5 = arith.constant 0.000000e+00 : f32
    %6 = vector.broadcast %cst_5 : f32 to vector<32x64xf32>
    %7 = arith.maximumf %5, %6 : vector<32x64xf32>
    %c0_6 = arith.constant 0 : index
    %c0_7 = arith.constant 0 : index
    %8 = vector.load %arg4[%c0_6, %c0_7] : memref<64x64xf32, #tpu.memory_space<vmem>>, vector<64x64xf32>
    %cst_8 = arith.constant dense<0.000000e+00> : vector<32x64xf32>
    %9 = tpu.matmul %7, %8, %cst_8 {dimension_numbers = #tpu.dot_dimension_numbers<[1], [0], [0], [1], [0, 0, 1, 1], [], []>} : vector<32x64xf32>, vector<64x64xf32>, vector<32x64xf32> -> vector<32x64xf32>
    %c0_9 = arith.constant 0 : index
    %c0_10 = arith.constant 0 : index
    %10 = vector.load %arg5[%c0_9, %c0_10] : memref<1x64xf32, #tpu.memory_space<vmem>>, vector<1x64xf32>
    %11 = vector.broadcast %10 : vector<1x64xf32> to vector<32x64xf32>
    %12 = arith.addf %9, %11 : vector<32x64xf32>
    %cst_11 = arith.constant 0.000000e+00 : f32
    %13 = vector.broadcast %cst_11 : f32 to vector<32x64xf32>
    %14 = arith.maximumf %12, %13 : vector<32x64xf32>
    %c0_12 = arith.constant 0 : index
    %c0_13 = arith.constant 0 : index
    %15 = vector.load %arg6[%c0_12, %c0_13] : memref<64x8xf32, #tpu.memory_space<vmem>>, vector<64x8xf32>
    %cst_14 = arith.constant dense<0.000000e+00> : vector<32x8xf32>
    %16 = tpu.matmul %14, %15, %cst_14 {dimension_numbers = #tpu.dot_dimension_numbers<[1], [0], [0], [1], [0, 0, 1, 1], [], []>} : vector<32x64xf32>, vector<64x8xf32>, vector<32x8xf32> -> vector<32x8xf32>
    %c0_15 = arith.constant 0 : index
    %c0_16 = arith.constant 0 : index
    %17 = vector.load %arg7[%c0_15, %c0_16] : memref<1x8xf32, #tpu.memory_space<vmem>>, vector<1x8xf32>
    %18 = vector.broadcast %17 : vector<1x8xf32> to vector<32x8xf32>
    %19 = arith.addf %16, %18 : vector<32x8xf32>
    %c0_17 = arith.constant 0 : index
    %c0_18 = arith.constant 0 : index
    %20 = vector.load %arg8[%c0_17, %c0_18] : memref<32x8xf32, #tpu.memory_space<vmem>>, vector<32x8xf32>
    tpu.vector_store %arg8[%c0_17, %c0_18], %19 {strides = array<i32>} : memref<32x8xf32, #tpu.memory_space<vmem>>, vector<32x8xf32>,
    return
  }
  func.func @transform_0(%arg0: i32) -> (i32, i32) {
    %c0_i32 = arith.constant 0 : i32
    %c0_i32_0 = arith.constant 0 : i32
    return %arg0, %c0_i32 : i32, i32
  }
  func.func @transform_1(%arg0: i32) -> (i32, i32) {
    %c0_i32 = arith.constant 0 : i32
    %c0_i32_0 = arith.constant 0 : i32
    %c0_i32_1 = arith.constant 0 : i32
    return %c0_i32, %c0_i32_0 : i32, i32
  }
  func.func @transform_2(%arg0: i32) -> (i32, i32) {
    %c0_i32 = arith.constant 0 : i32
    %c0_i32_0 = arith.constant 0 : i32
    %c0_i32_1 = arith.constant 0 : i32
    return %c0_i32, %c0_i32_0 : i32, i32
  }
  func.func @transform_3(%arg0: i32) -> (i32, i32) {
    %c0_i32 = arith.constant 0 : i32
    %c0_i32_0 = arith.constant 0 : i32
    %c0_i32_1 = arith.constant 0 : i32
    return %c0_i32, %c0_i32_0 : i32, i32
  }
  func.func @transform_4(%arg0: i32) -> (i32, i32) {
    %c0_i32 = arith.constant 0 : i32
    %c0_i32_0 = arith.constant 0 : i32
    %c0_i32_1 = arith.constant 0 : i32
    return %c0_i32, %c0_i32_0 : i32, i32
  }
  func.func @transform_5(%arg0: i32) -> (i32, i32) {
    %c0_i32 = arith.constant 0 : i32
    %c0_i32_0 = arith.constant 0 : i32
    %c0_i32_1 = arith.constant 0 : i32
    return %c0_i32, %c0_i32_0 : i32, i32
  }
  func.func @transform_6(%arg0: i32) -> (i32, i32) {
    %c0_i32 = arith.constant 0 : i32
    %c0_i32_0 = arith.constant 0 : i32
    %c0_i32_1 = arith.constant 0 : i32
    return %c0_i32, %c0_i32_0 : i32, i32
  }
  func.func @transform_7(%arg0: i32) -> (i32, i32) {
    %c0_i32 = arith.constant 0 : i32
    %c0_i32_0 = arith.constant 0 : i32
    return %arg0, %c0_i32 : i32, i32
  }
}

</mosaic_0001>

<bundles_post_ra>
// kernel: policy_network_forward.1
= control target key start
LH: loop header
LB: loop body
LE: loop exit
PB: predicated region body
PF: predicated region fallthrough
CT: control target
= control target key end

     0   :  { %vm38_vm0 = vcmask 64512   ;;  %vm155_vm1 = vcmask 523264   ;;  %s645_s1 = inlined_call_operand.vmem [shape: f32[8,64], index: 1, kind: input, shape index: {}]   ;;  %s646_s0 = inlined_call_operand.vmem [shape: f32[32,8], index: 0, kind: input, shape index: {}]   ;;  %s647_s3 = inlined_call_operand.vmem [shape: f32[64,64], index: 3, kind: input, shape index: {}]   ;;  %s648_s5 = inlined_call_operand.vmem [shape: f32[64,8], index: 5, kind: input, shape index: {}]   ;;  %s649_s2 = inlined_call_operand.vmem [shape: f32[1,64], index: 2, kind: input, shape index: {}]   ;;  %s650_s4 = inlined_call_operand.vmem [shape: f32[1,64], index: 4, kind: input, shape index: {}]   ;;  %s651_s6 = inlined_call_operand.vmem [shape: f32[1,8], index: 6, kind: input, shape index: {}]   ;;  %s652_s7 = inlined_call_operand.vmem [shape: f32[32,8], index: 7, kind: output, shape index: {}]  }
   0x1   :  { %v30_v0 = vld [vmem:[%s645_s1] sm:$0xff]  ;;  %v27_v2 = vld [vmem:[%s646_s0 + $0x8] sm:$0xff]  ;;  %v28_v3 = vld [vmem:[%s646_s0 + $0x10] sm:$0xff] }
   0x2   :  { %v26_v1 = vld [vmem:[%s646_s0] sm:$0xff]  ;;  %421 = vmatprep.subr.mxu0 %v30_v0  ;;  %v141_v5 = vld [vmem:[%s647_s3 + $0x8] sm:$0xff]  ;;  %v142_v6 = vld [vmem:[%s647_s3 + $0x10] sm:$0xff] }
   0x3   :  { %423 = vmatprep.mubr.msk.f32.mxu0 %vm38_vm0, %v26_v1  ;;  %v140_v4 = vld [vmem:[%s647_s3] sm:$0xff]  ;;  %422 = vmatpush3.msra.mxu0 %v30_v0  ;;  %v143_v7 = vld [vmem:[%s647_s3 + $0x18] sm:$0xff]  ;;  %v145_v12 = vld [vmem:[%s647_s3 + $0x28] sm:$0xff] }
   0x4   :  { %424 = vmatmul.mubr.msk.f32.vlgmr.msra.gmra.mrb[0].mxu0 %vm38_vm0, %v27_v2  ;;  %v473_v8 = vpack.c.bf16 %v141_v5, %v140_v4  ;;  %v477_v9 = vpack.c.bf16 %v143_v7, %v142_v6  ;;  %v29_v10 = vld [vmem:[%s646_s0 + $0x18] sm:$0xff]  ;;  %v144_v11 = vld [vmem:[%s647_s3 + $0x20] sm:$0xff]  ;;  %v146_v14 = vld [vmem:[%s647_s3 + $0x30] sm:$0xff] }
   0x5   :  { %426 = vmatprep.mubr.msk.f32.mxu0 %vm38_vm0, %v28_v3  ;;  %v481_v13 = vpack.c.bf16 %v145_v12, %v144_v11  ;;  %v147_v15 = vld [vmem:[%s647_s3 + $0x38] sm:$0xff]  ;;  %v257_v17 = vld [vmem:[%s648_s5] sm:$0xff]  ;;  %v258_v18 = vld [vmem:[%s648_s5 + $0x8] sm:$0xff] }
   0x6   :  { %474 = vmatprep.subr.bf16.mxu1 %v473_v8  ;;  %v485_v16 = vpack.c.bf16 %v147_v15, %v146_v14  ;;  %v259_v19 = vld [vmem:[%s648_s5 + $0x10] sm:$0xff]  ;;  %v489_v20 = vpack.c.bf16 %v258_v18, %v257_v17  ;;  %v260_v21 = vld [vmem:[%s648_s5 + $0x18] sm:$0xff]  ;;  %v261_v23 = vld [vmem:[%s648_s5 + $0x20] sm:$0xff] }
   0x7   :  { %476 = vmatpush3.bf16.msra.mxu1 %v473_v8  ;;  %v493_v22 = vpack.c.bf16 %v260_v21, %v259_v19  ;;  %v262_v24 = vld [vmem:[%s648_s5 + $0x28] sm:$0xff]  ;;  %v377_v26 = vld [vmem:[%s649_s2] ss:$0 sm:$0xff]  ;;  %v263_v39 = vld [vmem:[%s648_s5 + $0x30] sm:$0xff] }
   0x8   :  { %427 = vmatmul.mubr.msk.f32.gmra.mrb[2].mxu0 %vm38_vm0, %v29_v10  ;;  %478 = vmatprep.subr.bf16.mxu1 %v477_v9  ;;  %v497_v25 = vpack.c.bf16 %v262_v24, %v261_v23  ;;  %v264_v40 = vld [vmem:[%s648_s5 + $0x38] sm:$0xff]  ;;  %v382_v42 = vld [vmem:[%s650_s4] ss:$0 sm:$0xff] }
   0x9   :  { %490 = vmatprep.subr.bf16.mxu0 %v489_v20  ;;  %v501_v41 = vpack.c.bf16 %v264_v40, %v263_v39  ;;  %v387_v55 = vld [vmem:[%s651_s6] ss:$0 sm:$0xff] }
   0xa   :  { %492 = vmatpush3.bf16.msra.mxu0 %v489_v20 }
   0xb   :  { %480 = vmatpush3.bf16.msra.mxu1 %v477_v9  ;;  %494 = vmatprep.subr.bf16.mxu0 %v493_v22 }
   0xc   :  { %482 = vmatprep.subr.bf16.mxu1 %v481_v13 }
   0xe   :  { %496 = vmatpush3.bf16.msra.mxu0 %v493_v22 }
   0xf   :  { %484 = vmatpush3.bf16.msra.mxu1 %v481_v13  ;;  %498 = vmatprep.subr.bf16.mxu0 %v497_v25 }
  0x10   :  { %486 = vmatprep.subr.bf16.mxu1 %v485_v16 }
  0x12   :  { %500 = vmatpush3.bf16.msra.mxu0 %v497_v25 }
  0x13   :  { %488 = vmatpush3.bf16.msra.mxu1 %v485_v16  ;;  %502 = vmatprep.subr.bf16.mxu0 %v501_v41 }
  0x16   :  { %504 = vmatpush3.bf16.msra.mxu0 %v501_v41 }
  0xd7   :  { %v425_v27 = vpop.f32.mrb[0].mxu0 }
  0xd8   :  { %v123_v28 = vadd.f32 %v425_v27, %v377_v26  ;;  %v117_v29 = vpop.f32.mrb[1].mxu0 }
  0xd9   :  { %v118_v30 = vadd.f32 %v377_v26, %v117_v29 }
  0xda   :  { %v137_v33 = vmax.f32 %v123_v28, 0.0 }
  0xdb   :  { %v136_v31 = vmax.f32 %v118_v30, 0.0  ;;  %v428_v32 = vpop.f32.mrb[2].mxu0 }
  0xdc   :  { %v133_v34 = vadd.f32 %v428_v32, %v377_v26  ;;  %v127_v35 = vpop.f32.mrb[3].mxu0 }
  0xdd   :  { %v128_v36 = vadd.f32 %v377_v26, %v127_v35  ;;  %445 = vmatprep.mubr.msk.f32.mxu1 %vm155_vm1, %v136_v31 }
  0xde   :  { %446 = vmatmul.mubr.msk.f32.vlgmr.msra.gmra.mrb[0].mxu1 %vm155_vm1, %v137_v33  ;;  %v139_v38 = vmax.f32 %v133_v34, 0.0 }
  0xdf   :  { %v138_v37 = vmax.f32 %v128_v36, 0.0 }
  0xe1   :  { %448 = vmatprep.mubr.msk.f32.mxu1 %vm155_vm1, %v138_v37 }
  0xe2   :  { %449 = vmatmul.mubr.msk.f32.gmra.mrb[2].mxu1 %vm155_vm1, %v139_v38 }
 0x1b1   :  { %v447_v43 = vpop.f32.mrb[0].mxu1 }
 0x1b2   :  { %v240_v44 = vadd.f32 %v447_v43, %v382_v42  ;;  %v234_v45 = vpop.f32.mrb[1].mxu1 }
 0x1b3   :  { %v235_v46 = vadd.f32 %v382_v42, %v234_v45 }
 0x1b4   :  { %v254_v49 = vmax.f32 %v240_v44, 0.0 }
 0x1b5   :  { %v253_v47 = vmax.f32 %v235_v46, 0.0  ;;  %v450_v48 = vpop.f32.mrb[2].mxu1 }
 0x1b6   :  { %v250_v50 = vadd.f32 %v450_v48, %v382_v42  ;;  %v244_v51 = vpop.f32.mrb[3].mxu1 }
 0x1b7   :  { %v245_v52 = vadd.f32 %v382_v42, %v244_v51  ;;  %467 = vmatprep.mubr.msk.f32.mxu0 %vm155_vm1, %v253_v47 }
 0x1b8   :  { %468 = vmatmul.mubr.msk.f32.vlgmr.msra.gmra.mrb[4].mxu0 %vm155_vm1, %v254_v49  ;;  %v256_v54 = vmax.f32 %v250_v50, 0.0 }
 0x1b9   :  { %v255_v53 = vmax.f32 %v245_v52, 0.0 }
 0x1bb   :  { %470 = vmatprep.mubr.msk.f32.mxu0 %vm155_vm1, %v255_v53 }
 0x1bc   :  { %471 = vmatmul.mubr.msk.f32.gmra.mrb[6].mxu0 %vm155_vm1, %v256_v54 }
 0x28b   :  { %v469_v56 = vpop.f32.mrb[4].mxu0 }
 0x28c   :  { %v356_v57 = vadd.f32 %v469_v56, %v387_v55  ;;  %v350_v58 = vpop.f32.mrb[5].mxu0 }
 0x28d   :  { %v351_v59 = vadd.f32 %v387_v55, %v350_v58 }
 0x28e   :  { %370 = vst.msk [vmem:[%s652_s7 + $0x8] sm:$0xff] %vm38_vm0, %v356_v57 }
 0x28f   :  { %369 = vst.msk [vmem:[%s652_s7] sm:$0xff] %vm38_vm0, %v351_v59  ;;  %v472_v60 = vpop.f32.mrb[6].mxu0 }
 0x290   :  { %v366_v61 = vadd.f32 %v472_v60, %v387_v55  ;;  %v360_v62 = vpop.f32.mrb[7].mxu0 }
 0x291   :  { %v361_v63 = vadd.f32 %v387_v55, %v360_v62 }
 0x292   :  { %372 = vst.msk [vmem:[%s652_s7 + $0x18] sm:$0xff] %vm38_vm0, %v366_v61 }
 0x293   :  { %371 = vst.msk [vmem:[%s652_s7 + $0x10] sm:$0xff] %vm38_vm0, %v361_v63 }

</bundles_post_ra>
